<compile_context>
chip_gen: v6e
topology: v6e:2x2x1
jax: 0.10.0
libtpu: 0.0.40
codegen_flags: <defaults>
</compile_context>

<pallas_src>
import jax
import jax.numpy as jnp
from jax.experimental import pallas as pl
from jax.experimental.pallas import tpu as pltpu


def mlp_kernel(xT_ref, p_ref, o_ref):
    # xT_ref : (IN, TB)      -- batch on the lane axis
    # p_ref  : (H, IN + 3)   -- [:, :IN] = W1 (out, in), [:, IN] = b1,
    #                           [:, IN+1] = W2 row, [0, IN+2] = b2
    # o_ref  : (1, TB)
    in_dim = xT_ref.shape[0]

    xT = xT_ref[...]                                   # (IN, TB)
    W1 = p_ref[:, 0:in_dim]                            # (H, IN)
    b1 = p_ref[:, in_dim:in_dim + 1]                   # (H, 1)
    w2 = p_ref[:, in_dim + 1:in_dim + 2]               # (H, 1)
    b2 = p_ref[0:1, in_dim + 2:in_dim + 3]             # (1, 1)

    # Layer 1 on the VPU: hT = relu(W1 @ xT + b1) as IN rank-1 broadcast FMAs.
    hT = b1 + W1[:, 0:1] * xT[0:1, :]                  # (H, TB)
    for k in range(1, in_dim):
        hT = hT + W1[:, k:k + 1] * xT[k:k + 1, :]
    hT = jnp.maximum(hT, 0.0)

    # Layer 2: elementwise mul + sublane reduce (XLU), bias via (1,1) broadcast.
    yT = jnp.sum(w2 * hT, axis=0, keepdims=True) + b2  # (1, TB)
    o_ref[...] = yT.astype(o_ref.dtype)


def _round_up(x, m):
    return ((x + m - 1) // m) * m


def simple_mlp(x, W1, b1, W2, b2, tb_max=512):
    """Forward pass matching PyTorch SimpleMLP.

    x: (B, IN); W1: (H, IN); b1: (H,); W2: (1, H); b2: (1,)  (PyTorch layouts).
    Returns (B, 1).
    """
    B, in_dim = x.shape
    H = W1.shape[0]
    f32 = jnp.float32

    # Batch tile: multiple of 128 (lane width), capped so tiles also fit
    # comfortably in v7x's smaller scoped VMEM.
    TB = min(_round_up(B, 128), tb_max)
    grid_b = pl.cdiv(B, TB)
    B_pad = grid_b * TB

    # Pack all parameters into a single resident VMEM slab: (H, IN + 3).
    params = jnp.concatenate(
        [
            W1.astype(f32),                                       # (H, IN)
            b1.reshape(H, 1).astype(f32),                         # (H, 1)
            W2.reshape(H, 1).astype(f32),                         # (H, 1)
            jnp.zeros((H, 1), f32).at[0, 0].set(b2[0].astype(f32)),
        ],
        axis=1,
    )

    # Lane-dense input: x^T padded to (IN, B_pad) with batch on lanes.
    xT = jnp.zeros((in_dim, B_pad), f32).at[:, :B].set(x.T.astype(f32))

    flops = 2 * B_pad * (in_dim * H + H)  # both layers, mul+add
    bytes_accessed = (xT.size + params.size + B_pad) * 4

    out_t = pl.pallas_call(
        mlp_kernel,
        out_shape=jax.ShapeDtypeStruct((1, B_pad), f32),
        grid=(grid_b,),
        in_specs=[
            pl.BlockSpec((in_dim, TB), lambda i: (0, i)),     # x tile
            pl.BlockSpec((H, in_dim + 3), lambda i: (0, 0)),  # params, resident
        ],
        out_specs=pl.BlockSpec((1, TB), lambda i: (0, i)),    # lane-dense output
        compiler_params=pltpu.CompilerParams(
            dimension_semantics=("parallel",),
        ),
        cost_estimate=pl.CostEstimate(
            flops=flops, transcendentals=0, bytes_accessed=bytes_accessed
        ),
    )(xT, params)

    return out_t[:, :B].T.astype(x.dtype)  # (B, 1)


def reference_mlp(x, W1, b1, W2, b2):
    h = jnp.maximum(x @ W1.T + b1, 0.0)
    return h @ W2.T + b2


if __name__ == "__main__":
    key = jax.random.PRNGKey(0)
    kx, k1, kb1, k2, kb2 = jax.random.split(key, 5)

    # Input: batch=2, in_features=4 (matches X = torch.rand(2, 4)).
    x = jax.random.uniform(kx, (2, 4), dtype=jnp.float32)

    # Parameters in PyTorch nn.Linear layouts: weight (out, in), bias (out,).
    bound1 = 1.0 / jnp.sqrt(4.0)
    W1 = jax.random.uniform(k1, (8, 4), dtype=jnp.float32, minval=-bound1, maxval=bound1)
    b1 = jax.random.uniform(kb1, (8,), dtype=jnp.float32, minval=-bound1, maxval=bound1)

    bound2 = 1.0 / jnp.sqrt(8.0)
    W2 = jax.random.uniform(k2, (1, 8), dtype=jnp.float32, minval=-bound2, maxval=bound2)
    b2 = jax.random.uniform(kb2, (1,), dtype=jnp.float32, minval=-bound2, maxval=bound2)

    out = simple_mlp(x, W1, b1, W2, b2)
    jax.block_until_ready(out)

    ref = reference_mlp(x, W1, b1, W2, b2)
    assert out.shape == (2, 1), out.shape
    assert jnp.allclose(out, ref, atol=1e-5, rtol=1e-5), (out, ref)

    print("KERNEL_OK")
</pallas_src>

<mosaic_0001>
module attributes {stable_mosaic.version = 11 : i64} {
  func.func @mlp_kernel(%arg0: i32, %arg1: memref<4x128xf32, #tpu.memory_space<vmem>>, %arg2: memref<8x7xf32, #tpu.memory_space<vmem>>, %arg3: memref<1x128xf32, #tpu.memory_space<vmem>>) attributes {dimension_semantics = [#tpu.dimension_semantics<parallel>], iteration_bounds = array<i64: 1>, scalar_prefetch = 0 : i64, scratch_operands = 0 : i64, tpu.core_type = #tpu.core_type<tc>, window_params = [{transform_indices = @transform_0, window_bounds = array<i64: 4, 128>}, {pipeline_mode = #tpu.pipeline_mode<synchronous>, transform_indices = @transform_1, window_bounds = array<i64: 8, 7>}, {transform_indices = @transform_2, window_bounds = array<i64: 1, 128>}]} {
    %c0 = arith.constant 0 : index
    %c0_0 = arith.constant 0 : index
    %0 = vector.load %arg1[%c0, %c0_0] : memref<4x128xf32, #tpu.memory_space<vmem>>, vector<4x128xf32>
    %c0_1 = arith.constant 0 : index
    %c0_2 = arith.constant 0 : index
    %1 = vector.load %arg2[%c0_1, %c0_2] : memref<8x7xf32, #tpu.memory_space<vmem>>, vector<8x4xf32>
    %c0_3 = arith.constant 0 : index
    %c4 = arith.constant 4 : index
    %2 = vector.load %arg2[%c0_3, %c4] : memref<8x7xf32, #tpu.memory_space<vmem>>, vector<8x1xf32>
    %c0_4 = arith.constant 0 : index
    %c5 = arith.constant 5 : index
    %3 = vector.load %arg2[%c0_4, %c5] : memref<8x7xf32, #tpu.memory_space<vmem>>, vector<8x1xf32>
    %c0_5 = arith.constant 0 : index
    %c6 = arith.constant 6 : index
    %4 = vector.load %arg2[%c0_5, %c6] : memref<8x7xf32, #tpu.memory_space<vmem>>, vector<1x1xf32>
    %5 = vector.extract_strided_slice %1 {offsets = [0, 0], sizes = [8, 1], strides = [1, 1]} : vector<8x4xf32> to vector<8x1xf32>
    %6 = vector.extract_strided_slice %0 {offsets = [0, 0], sizes = [1, 128], strides = [1, 1]} : vector<4x128xf32> to vector<1x128xf32>
    %7 = vector.broadcast %5 : vector<8x1xf32> to vector<8x128xf32>
    %8 = vector.broadcast %6 : vector<1x128xf32> to vector<8x128xf32>
    %9 = arith.mulf %7, %8 : vector<8x128xf32>
    %10 = vector.broadcast %2 : vector<8x1xf32> to vector<8x128xf32>
    %11 = arith.addf %10, %9 : vector<8x128xf32>
    %12 = vector.extract_strided_slice %1 {offsets = [0, 1], sizes = [8, 1], strides = [1, 1]} : vector<8x4xf32> to vector<8x1xf32>
    %13 = vector.extract_strided_slice %0 {offsets = [1, 0], sizes = [1, 128], strides = [1, 1]} : vector<4x128xf32> to vector<1x128xf32>
    %14 = vector.broadcast %12 : vector<8x1xf32> to vector<8x128xf32>
    %15 = vector.broadcast %13 : vector<1x128xf32> to vector<8x128xf32>
    %16 = arith.mulf %14, %15 : vector<8x128xf32>
    %17 = arith.addf %11, %16 : vector<8x128xf32>
    %18 = vector.extract_strided_slice %1 {offsets = [0, 2], sizes = [8, 1], strides = [1, 1]} : vector<8x4xf32> to vector<8x1xf32>
    %19 = vector.extract_strided_slice %0 {offsets = [2, 0], sizes = [1, 128], strides = [1, 1]} : vector<4x128xf32> to vector<1x128xf32>
    %20 = vector.broadcast %18 : vector<8x1xf32> to vector<8x128xf32>
    %21 = vector.broadcast %19 : vector<1x128xf32> to vector<8x128xf32>
    %22 = arith.mulf %20, %21 : vector<8x128xf32>
    %23 = arith.addf %17, %22 : vector<8x128xf32>
    %24 = vector.extract_strided_slice %1 {offsets = [0, 3], sizes = [8, 1], strides = [1, 1]} : vector<8x4xf32> to vector<8x1xf32>
    %25 = vector.extract_strided_slice %0 {offsets = [3, 0], sizes = [1, 128], strides = [1, 1]} : vector<4x128xf32> to vector<1x128xf32>
    %26 = vector.broadcast %24 : vector<8x1xf32> to vector<8x128xf32>
    %27 = vector.broadcast %25 : vector<1x128xf32> to vector<8x128xf32>
    %28 = arith.mulf %26, %27 : vector<8x128xf32>
    %29 = arith.addf %23, %28 : vector<8x128xf32>
    %cst = arith.constant 0.000000e+00 : f32
    %30 = vector.broadcast %cst : f32 to vector<8x128xf32>
    %31 = arith.maximumf %29, %30 : vector<8x128xf32>
    %32 = vector.broadcast %3 : vector<8x1xf32> to vector<8x128xf32>
    %33 = arith.mulf %32, %31 : vector<8x128xf32>
    %cst_6 = arith.constant dense<0.000000e+00> : vector<128xf32>
    %34 = vector.multi_reduction <add>, %33, %cst_6 [0] : vector<8x128xf32> to vector<128xf32>
    %35 = vector.shape_cast %34 : vector<128xf32> to vector<1x128xf32>
    %36 = vector.broadcast %4 : vector<1x1xf32> to vector<1x128xf32>
    %37 = arith.addf %35, %36 : vector<1x128xf32>
    %c0_7 = arith.constant 0 : index
    %c0_8 = arith.constant 0 : index
    %38 = vector.load %arg3[%c0_7, %c0_8] : memref<1x128xf32, #tpu.memory_space<vmem>>, vector<1x128xf32>
    tpu.vector_store %arg3[%c0_7, %c0_8], %37 {strides = array<i32>} : memref<1x128xf32, #tpu.memory_space<vmem>>, vector<1x128xf32>,
    return
  }
  func.func @transform_0(%arg0: i32) -> (i32, i32) {
    %c0_i32 = arith.constant 0 : i32
    %c0_i32_0 = arith.constant 0 : i32
    return %c0_i32, %arg0 : i32, i32
  }
  func.func @transform_1(%arg0: i32) -> (i32, i32) {
    %c0_i32 = arith.constant 0 : i32
    %c0_i32_0 = arith.constant 0 : i32
    %c0_i32_1 = arith.constant 0 : i32
    return %c0_i32, %c0_i32_0 : i32, i32
  }
  func.func @transform_2(%arg0: i32) -> (i32, i32) {
    %c0_i32 = arith.constant 0 : i32
    %c0_i32_0 = arith.constant 0 : i32
    return %c0_i32, %arg0 : i32, i32
  }
}

</mosaic_0001>

<bundles_post_ra>
// kernel: tpu_custom_call.1
= control target key start
LH: loop header
LB: loop body
LE: loop exit
PB: predicated region body
PF: predicated region fallthrough
CT: control target
= control target key end

     0   :  { %7 = vsyncpa [#allocation3], 0  ;;  %s237_s0 = inlined_call_operand.hbm [shape: f32[4,128], index: 0, kind: input, shape index: {}]   ;;  %s238_s1 = inlined_call_operand.hbm [shape: f32[8,7], index: 1, kind: input, shape index: {}]   ;;  %s239_s2 = inlined_call_operand.hbm [shape: f32[1,128], index: 2, kind: output, shape index: {}]  }
   0x1   :  { %8 = vsyncpa [#allocation6], 0 }
   0x2   :  { %9 = vsyncpa [#allocation4], 0  ;;  %s203_s9 = smov [#allocation2]   ;;  %s204_s11 = smov [#allocation5]  }
   0x3   :  { %s16_s10 = sshll.u32 %s203_s9, 4  ;;  %s26_s12 = sshll.u32 %s204_s11, 4  ;;  %s17_s10 = int_to_ptr.vmem [resolvable:$true] %s16_s10  ;;  %s27_s12 = int_to_ptr.vmem [resolvable:$true] %s26_s12 }
   0x4   :  { %s145_s13 = scalar_lea.vmem %s17_s10, 64  ;;  %p150_p1 = scmp.lt.s32.totalorder %s17_s10, %s17_s10 }
   0x5   :  { %p146_p0 = scmp.ne.s32.totalorder %s17_s10, %s145_s13  ;;  %p151_p2 = scmp.lt.s32.totalorder %s145_s13, %s145_s13 }
   0x7   :  { %p152_p3 = por %p151_p2, %p150_p1 }
   0x9   :  { %p153_p4 = pnand %p152_p3, %p146_p0 }
   0xb   :  { %156 = shalt.err (!%p153_p4)
}
   0xc   :  { %19 = dma.hbm_to_vmem [thread:$0]  %s237_s0, 64, %s17_s10, [#allocation3]  }
   0xd   :  { %s165_s16 = scalar_lea.vmem %s27_s12, 128  ;;  %p170_p6 = scmp.lt.s32.totalorder %s27_s12, %s27_s12 }
   0xe   :  { %p166_p5 = scmp.ne.s32.totalorder %s27_s12, %s165_s16  ;;  %p171_p7 = scmp.lt.s32.totalorder %s165_s16, %s165_s16 }
  0x10   :  { %p172_p8 = por %p171_p7, %p170_p6 }
  0x12   :  { %p173_p9 = pnand %p172_p8, %p166_p5 }
  0x14   :  { %176 = shalt.err (!%p173_p9)
}
  0x15   :  { %29 = dma.hbm_to_vmem [thread:$0]  %s238_s1, 128, %s27_s12, [#allocation6]  }
  0x16   :  { %197 = dma.done.wait [#allocation3], 64  }
  0x17   :  { %198 = vsyncadd [#allocation3], 4294967232 }
  0x18   :  { %199 = dma.done.wait [#allocation6], 128  }
  0x19   :  { %200 = vsyncadd [#allocation6], 4294967168  ;;  %v205_v0 = vmov 1   ;;  %v206_v1 = vmov 0   ;;  %v37_v2 = vld [vmem:[#allocation5] sm:$0xff]  ;;  %v207_v3 = vmov 2   ;;  %v44_v9 = vlaneseq }
  0x1a   :  { %131 = vset.pattern.permute.xlu1 %v205_v0  ;;  %129 = vset.pattern.permute.xlu0 %v206_v1  ;;  %v208_v4 = vmov 4   ;;  %v209_v5 = vmov 3   ;;  %v210_v6 = vmov 5   ;;  %v38_v7 = vld [vmem:[#allocation5] sm:$0x1]  ;;  %v211_v8 = vmov 6  }
  0x1b   :  { %55 = vperm.xlu1 %131, %v37_v2   ;;  %41 = vperm.xlu0 %129, %v37_v2   ;;  %v45_v10 = vshrl.u32 %v44_v9, 7  ;;  %v36_v12 = vld [vmem:[#allocation2] sm:$0xf]  ;;  %s212_s0 = smov [#allocation7]  }
  0x1c   :  { %s109_s1 = sshll.u32 %s212_s0, 4  ;;  %s110_s1 = int_to_ptr.vmem [resolvable:$true] %s109_s1 }
  0x1d   :  { %v46_v11 = vsub.s32 0, %v45_v10  ;;  %v60_v13 = vsub.s32 1, %v45_v10  ;;  %v70_v17 = vsub.s32 2, %v45_v10  ;;  %v80_v19 = vsub.s32 3, %v45_v10  ;;  %s177_s19 = scalar_lea.vmem %s110_s1, 16  ;;  %s181_s20 = scalar_lea.vmem %s110_s1, 32 }
  0x1e   :  { %p178_p10 = scmp.ne.s32.totalorder %s110_s1, %s177_s19  ;;  %p182_p11 = scmp.lt.s32.totalorder %s110_s1, %s110_s1 }
  0x1f   :  { %132 = vset.pattern.permute.xlu1 %v207_v3  ;;  %130 = vset.pattern.permute.xlu0 %v208_v4  ;;  %v47_v16 = vrot.slane %v36_v12, %v46_v11  ;;  %v61_v18 = vrot.slane %v36_v12, %v60_v13  ;;  %v71_v21 = vrot.slane %v36_v12, %v70_v17  ;;  %p183_p12 = scmp.lt.s32.totalorder %s181_s20, %s177_s19 }
  0x20   :  { %65 = vperm.xlu1 %132, %v37_v2   ;;  %50 = vperm.xlu0 %130, %v37_v2   ;;  %v81_v26 = vrot.slane %v36_v12, %v80_v19 }
  0x21   :  { %p184_p13 = por %p183_p12, %p182_p11 }
  0x23   :  { %p185_p0 = pnand %p184_p13, %p178_p10 }
  0x24   :  { %133 = vset.pattern.permute.xlu1 %v209_v5  ;;  %134 = vset.pattern.permute.xlu0 %v210_v6 }
  0x25   :  { %75 = vperm.xlu1 %133, %v37_v2   ;;  %86 = vperm.xlu0 %134, %v37_v2  }
  0x29   :  { %135 = vset.pattern.permute.xlu1 %v211_v8  ;;  %136 = vset.pattern.permute.xlu0 %v211_v8 }
  0x2a   :  { %98 = vperm.xlu1 %135, %v38_v7  }
  0x96   :  { %v56_v14 = vpop.permute.xlu1 %55  ;;  %v42_v15 = vpop.permute.xlu0 %41 }
  0x97   :  { %v48_v20 = vmul.f32 %v47_v16, %v42_v15  ;;  %v62_v24 = vmul.f32 %v61_v18, %v56_v14 }
  0x9b   :  { %v66_v22 = vpop.permute.xlu1 %65  ;;  %v51_v23 = vpop.permute.xlu0 %50 }
  0x9c   :  { %v53_v25 = vadd.f32 %v51_v23, %v48_v20  ;;  %v72_v27 = vmul.f32 %v71_v21, %v66_v22 }
  0x9e   :  { %v63_v28 = vadd.f32 %v62_v24, %v53_v25 }
  0xa0   :  { %v76_v29 = vpop.permute.xlu1 %75  ;;  %v73_v30 = vadd.f32 %v72_v27, %v63_v28  ;;  %v87_v33 = vpop.permute.xlu0 %86 }
  0xa1   :  { %v82_v31 = vmul.f32 %v81_v26, %v76_v29 }
  0xa3   :  { %v83_v32 = vadd.f32 %v82_v31, %v73_v30 }
  0xa5   :  { %v84_v34 = vmax.f32 %v83_v32, 0.0  ;;  %v99_v41 = vpop.permute.xlu1 %98 }
  0xa7   :  { %v89_v35 = vmul.f32 %v87_v33, %v84_v34 }
  0xa9   :  { %v90_v36 = vrot.slane %v89_v35, 4 }
  0xab   :  { %v91_v37 = vadd.f32 %v90_v36, %v89_v35 }
  0xad   :  { %v92_v38 = vrot.slane %v91_v37, 2 }
  0xaf   :  { %v93_v39 = vadd.f32 %v92_v38, %v91_v37 }
  0xb1   :  { %v94_v40 = vrot.slane %v93_v39, 1 }
  0xb3   :  { %v95_v42 = vadd.f32 %v94_v40, %v93_v39 }
  0xb5   :  { %v101_v43 = vadd.f32 %v99_v41, %v95_v42 }
  0xb7   :  { %102 = vst [vmem:[#allocation7] sm:$0x1] %v101_v43 }
  0xb8   :  { %188 = shalt.err (!%p185_p0)
}
  0xb9   :  { %112 = dma.vmem_to_hbm [thread:$0]  %s110_s1, 16, %s239_s2, [#allocation4]  }
  0xba   :  { %201 = dma.done.wait [#allocation4], 16  }
  0xbb   :  { %202 = vsyncadd [#allocation4], 4294967280 }
  0xbc   :  { %116 = vsyncpa [#allocation3], 1 }
  0xbd   :  { %117 = vsyncpa [#allocation6], 1 }
  0xbe   :  { %118 = vsyncpa [#allocation4], 1 }

</bundles_post_ra>
